<compile_context>
chip_gen: v6e
topology: v6e:2x2x1
jax: 0.10.0
libtpu: 0.0.40
codegen_flags: <defaults>
</compile_context>

<pallas_src>
import functools

import jax
import jax.numpy as jnp
from jax import lax
from jax.experimental import pallas as pl
from jax.experimental.pallas import tpu as pltpu


def _mlp_channel_kernel(x_ref, w1_ref, b1_ref, w2_ref, b2_ref, o_ref,
                        *, chunk, nchunks):
    # x_ref: (1, C, TS)   w1_ref: (M, C)   b1_ref: (M, 1)
    # w2_ref: (C, M)      b2_ref: (C, 1)   o_ref: (1, C, TS)
    # Weights/biases are tiny, VMEM-resident and hoisted out of the chunk loop.
    w1 = w1_ref[...]                                   # native dtype -> MXU
    w2 = w2_ref[...]
    b1 = b1_ref[...].astype(jnp.float32)               # (M, 1)
    b2 = b2_ref[...].astype(jnp.float32)               # (C, 1)

    def body(i, carry):
        off = i * chunk
        if nchunks > 1:
            off = pl.multiple_of(off, chunk)
        xc = x_ref[0, :, pl.ds(off, chunk)]            # (C, chunk), storage dtype
        h = jnp.dot(w1, xc, preferred_element_type=jnp.float32)   # (M, chunk) f32
        # NOTE: tanh-approximate GELU; PyTorch nn.GELU() default is the exact
        # erf form (differences ~1e-3).  Evaluated in f32 (no bf16 EUP on v5e).
        h = jax.nn.gelu(h + b1, approximate=True)
        # TODO(synk): dropout is identity at inference; training-mode dropout
        # (pltpu PRNG + mask) is not implemented.
        y = jnp.dot(w2, h.astype(w2.dtype),
                    preferred_element_type=jnp.float32)           # (C, chunk) f32
        o_ref[0, :, pl.ds(off, chunk)] = (y + b2).astype(o_ref.dtype)
        return carry

    if nchunks == 1:
        body(0, 0)
    else:
        lax.fori_loop(0, nchunks, body, 0, unroll=nchunks <= 8)


def _vmem_budget_bytes():
    # Per-generation VMEM budget with headroom.  v5e/v6e: 128 MiB physical,
    # v7x: 64 MiB -- if the query fails, assume the smallest (v7x).
    try:
        cap = pltpu.get_tpu_info().vmem_capacity_bytes
    except Exception:  # pragma: no cover - conservative fallback
        cap = 64 << 20
    return int(min(cap // 2, 48 << 20))


def _pick_spatial_tile(s, c, itemsize, budget_bytes, batch):
    """Largest power-of-two multiple of 128 (<= 32768) such that the
    double-buffered in+out tiles stay well inside the VMEM budget, capped so
    the grid keeps >= 2 steps when batch == 1 (two v7x TensorCores)."""
    if s <= 128:
        return s                                   # block == full (short) axis
    s_blocks = -(-s // 128)
    max_blocks = s_blocks if batch > 1 else max(1, -(-s_blocks // 2))
    ts = 128
    while True:
        nxt = ts * 2
        if nxt > 32768:
            break
        # 2x double-buffered input + 2x double-buffered output tiles,
        # keep them under half the budget for weights/chunk/DMA headroom.
        if 4 * c * nxt * itemsize > budget_bytes // 2:
            break
        if nxt // 128 > max_blocks:
            break
        ts = nxt
    return ts


def _pick_chunk(ts, c, m):
    """Lane sub-chunk so the f32 working set (x, h, y chunks) stays roughly
    within the 256 KiB vreg file (avoids spilling the (M, TS) intermediate)."""
    if ts <= 128 or ts % 128 != 0:
        return ts
    ch = (160 * 1024) // ((m + 2 * c) * 4)
    ch = max(128, min(ts, (ch // 128) * 128))
    while ts % ch != 0:                            # ts is pow2*128 -> terminates
        ch -= 128
    return ch


def mlp_channel(x, w1, b1, w2, b2):
    """x: (B, C, D, H, W); w1: (M, C); b1: (M,); w2: (C, M); b2: (C,)."""
    B, C, D, H, W = x.shape
    M = w1.shape[0]
    S = D * H * W

    # Flatten spatial dims onto the lane axis.  No padding / slicing copies in
    # the wrapper: the op is pointwise along S, so Pallas' partial last block
    # is safe (undefined tail lanes on read, out-of-bounds writes discarded).
    x_flat = x.reshape(B, C, S)

    budget = _vmem_budget_bytes()
    TS = _pick_spatial_tile(S, C, jnp.dtype(x.dtype).itemsize, budget, B)
    chunk = _pick_chunk(TS, C, M)
    nchunks = TS // chunk
    grid = (B, pl.cdiv(S, TS))

    w1_2d = w1.reshape(M, C)
    b1_2d = b1.reshape(M, 1)
    w2_2d = w2.reshape(C, M)
    b2_2d = b2.reshape(C, 1)

    kernel = functools.partial(_mlp_channel_kernel, chunk=chunk, nchunks=nchunks)

    out_flat = pl.pallas_call(
        kernel,
        out_shape=jax.ShapeDtypeStruct((B, C, S), x.dtype),
        grid_spec=pltpu.PrefetchScalarGridSpec(
            num_scalar_prefetch=0,
            grid=grid,
            in_specs=[
                pl.BlockSpec((1, C, TS), lambda b, s: (b, 0, s)),
                pl.BlockSpec((M, C), lambda b, s: (0, 0)),   # VMEM-resident weights
                pl.BlockSpec((M, 1), lambda b, s: (0, 0)),
                pl.BlockSpec((C, M), lambda b, s: (0, 0)),
                pl.BlockSpec((C, 1), lambda b, s: (0, 0)),
            ],
            out_specs=pl.BlockSpec((1, C, TS), lambda b, s: (b, 0, s)),
        ),
        compiler_params=pltpu.CompilerParams(
            dimension_semantics=("parallel", "parallel"),
            vmem_limit_bytes=budget,
        ),
    )(x_flat, w1_2d, b1_2d, w2_2d, b2_2d)

    return out_flat.reshape(B, C, D, H, W)


if __name__ == "__main__":
    key = jax.random.PRNGKey(0)
    kx, k1, k2, k3, k4 = jax.random.split(key, 5)

    B, hidden, mlp_dim = 2, 8, 32
    Dd, Hd, Wd = 4, 8, 8                 # spatial -> S = 256
    S = Dd * Hd * Wd

    x = jax.random.normal(kx, (B, hidden, Dd, Hd, Wd), dtype=jnp.float32)
    # Conv3d weights with the 1x1x1 kernel squeezed to (out_ch, in_ch).
    w1 = jax.random.normal(k1, (mlp_dim, hidden), dtype=jnp.float32) * 0.1
    b1 = jax.random.normal(k2, (mlp_dim,), dtype=jnp.float32) * 0.1
    w2 = jax.random.normal(k3, (hidden, mlp_dim), dtype=jnp.float32) * 0.1
    b2 = jax.random.normal(k4, (hidden,), dtype=jnp.float32) * 0.1

    out = mlp_channel(x, w1, b1, w2, b2)
    jax.block_until_ready(out)

    # Reference in plain JAX (same GELU approximation; dropout = identity).
    xf = x.reshape(B, hidden, S)
    h = jnp.einsum("oc,bcs->bos", w1, xf) + b1[None, :, None]
    h = jax.nn.gelu(h, approximate=True)
    y = jnp.einsum("co,bos->bcs", w2, h) + b2[None, :, None]
    ref = y.reshape(B, hidden, Dd, Hd, Wd)

    assert out.shape == x.shape
    assert jnp.allclose(out, ref, atol=1e-4, rtol=1e-4)

    print("KERNEL_OK")
</pallas_src>

<mosaic_0001>
module attributes {stable_mosaic.version = 11 : i64} {
  func.func @_mlp_channel_kernel(%arg0: i32, %arg1: i32, %arg2: memref<1x8x256xf32, #tpu.memory_space<vmem>>, %arg3: memref<32x8xf32, #tpu.memory_space<vmem>>, %arg4: memref<32x1xf32, #tpu.memory_space<vmem>>, %arg5: memref<8x32xf32, #tpu.memory_space<vmem>>, %arg6: memref<8x1xf32, #tpu.memory_space<vmem>>, %arg7: memref<1x8x256xf32, #tpu.memory_space<vmem>>) attributes {dimension_semantics = [#tpu.dimension_semantics<parallel>, #tpu.dimension_semantics<parallel>], iteration_bounds = array<i64: 2, 1>, scalar_prefetch = 0 : i64, scratch_operands = 0 : i64, tpu.core_type = #tpu.core_type<tc>, window_params = [{transform_indices = @transform_0, window_bounds = array<i64: 1, 8, 256>}, {pipeline_mode = #tpu.pipeline_mode<synchronous>, transform_indices = @transform_1, window_bounds = array<i64: 32, 8>}, {pipeline_mode = #tpu.pipeline_mode<synchronous>, transform_indices = @transform_2, window_bounds = array<i64: 32, 1>}, {pipeline_mode = #tpu.pipeline_mode<synchronous>, transform_indices = @transform_3, window_bounds = array<i64: 8, 32>}, {pipeline_mode = #tpu.pipeline_mode<synchronous>, transform_indices = @transform_4, window_bounds = array<i64: 8, 1>}, {transform_indices = @transform_5, window_bounds = array<i64: 1, 8, 256>}]} {
    %c0 = arith.constant 0 : index
    %c0_0 = arith.constant 0 : index
    %0 = vector.load %arg3[%c0, %c0_0] : memref<32x8xf32, #tpu.memory_space<vmem>>, vector<32x8xf32>
    %c0_1 = arith.constant 0 : index
    %c0_2 = arith.constant 0 : index
    %1 = vector.load %arg5[%c0_1, %c0_2] : memref<8x32xf32, #tpu.memory_space<vmem>>, vector<8x32xf32>
    %c0_3 = arith.constant 0 : index
    %c0_4 = arith.constant 0 : index
    %2 = vector.load %arg4[%c0_3, %c0_4] : memref<32x1xf32, #tpu.memory_space<vmem>>, vector<32x1xf32>
    %c0_5 = arith.constant 0 : index
    %c0_6 = arith.constant 0 : index
    %3 = vector.load %arg6[%c0_5, %c0_6] : memref<8x1xf32, #tpu.memory_space<vmem>>, vector<8x1xf32>
    %c0_7 = arith.constant 0 : index
    %c0_8 = arith.constant 0 : index
    %c0_9 = arith.constant 0 : index
    %4 = vector.load %arg2[%c0_7, %c0_8, %c0_9] : memref<1x8x256xf32, #tpu.memory_space<vmem>>, vector<1x8x256xf32>
    %5 = vector.shape_cast %4 : vector<1x8x256xf32> to vector<8x256xf32>
    %cst = arith.constant dense<0.000000e+00> : vector<32x256xf32>
    %6 = tpu.matmul %0, %5, %cst {dimension_numbers = #tpu.dot_dimension_numbers<[1], [0], [0], [1], [0, 0, 1, 1], [], []>} : vector<32x8xf32>, vector<8x256xf32>, vector<32x256xf32> -> vector<32x256xf32>
    %7 = vector.broadcast %2 : vector<32x1xf32> to vector<32x256xf32>
    %8 = arith.addf %6, %7 : vector<32x256xf32>
    %9 = arith.mulf %8, %8 : vector<32x256xf32>
    %10 = arith.mulf %8, %9 : vector<32x256xf32>
    %cst_10 = arith.constant 4.471500e-02 : f32
    %11 = vector.broadcast %cst_10 : f32 to vector<32x256xf32>
    %12 = arith.mulf %11, %10 : vector<32x256xf32>
    %13 = arith.addf %8, %12 : vector<32x256xf32>
    %cst_11 = arith.constant 0.797884583 : f32
    %14 = vector.broadcast %cst_11 : f32 to vector<32x256xf32>
    %15 = arith.mulf %14, %13 : vector<32x256xf32>
    %16 = math.tanh %15 : vector<32x256xf32>
    %cst_12 = arith.constant 1.000000e+00 : f32
    %17 = vector.broadcast %cst_12 : f32 to vector<32x256xf32>
    %18 = arith.addf %17, %16 : vector<32x256xf32>
    %cst_13 = arith.constant 5.000000e-01 : f32
    %19 = vector.broadcast %cst_13 : f32 to vector<32x256xf32>
    %20 = arith.mulf %19, %18 : vector<32x256xf32>
    %21 = arith.mulf %8, %20 : vector<32x256xf32>
    %cst_14 = arith.constant dense<0.000000e+00> : vector<8x256xf32>
    %22 = tpu.matmul %1, %21, %cst_14 {dimension_numbers = #tpu.dot_dimension_numbers<[1], [0], [0], [1], [0, 0, 1, 1], [], []>} : vector<8x32xf32>, vector<32x256xf32>, vector<8x256xf32> -> vector<8x256xf32>
    %23 = vector.broadcast %3 : vector<8x1xf32> to vector<8x256xf32>
    %24 = arith.addf %22, %23 : vector<8x256xf32>
    %c0_15 = arith.constant 0 : index
    %c0_16 = arith.constant 0 : index
    %c0_17 = arith.constant 0 : index
    %25 = vector.load %arg7[%c0_15, %c0_16, %c0_17] : memref<1x8x256xf32, #tpu.memory_space<vmem>>, vector<1x8x256xf32>
    %26 = vector.shape_cast %25 : vector<1x8x256xf32> to vector<8x256xf32>
    %27 = vector.shape_cast %24 : vector<8x256xf32> to vector<1x8x256xf32>
    tpu.vector_store %arg7[%c0_15, %c0_16, %c0_17], %27 {strides = array<i32>} : memref<1x8x256xf32, #tpu.memory_space<vmem>>, vector<1x8x256xf32>,
    return
  }
  func.func @transform_0(%arg0: i32, %arg1: i32) -> (i32, i32, i32) {
    %c0_i32 = arith.constant 0 : i32
    %c0_i32_0 = arith.constant 0 : i32
    return %arg0, %c0_i32, %arg1 : i32, i32, i32
  }
  func.func @transform_1(%arg0: i32, %arg1: i32) -> (i32, i32) {
    %c0_i32 = arith.constant 0 : i32
    %c0_i32_0 = arith.constant 0 : i32
    %c0_i32_1 = arith.constant 0 : i32
    return %c0_i32, %c0_i32_0 : i32, i32
  }
  func.func @transform_2(%arg0: i32, %arg1: i32) -> (i32, i32) {
    %c0_i32 = arith.constant 0 : i32
    %c0_i32_0 = arith.constant 0 : i32
    %c0_i32_1 = arith.constant 0 : i32
    return %c0_i32, %c0_i32_0 : i32, i32
  }
  func.func @transform_3(%arg0: i32, %arg1: i32) -> (i32, i32) {
    %c0_i32 = arith.constant 0 : i32
    %c0_i32_0 = arith.constant 0 : i32
    %c0_i32_1 = arith.constant 0 : i32
    return %c0_i32, %c0_i32_0 : i32, i32
  }
  func.func @transform_4(%arg0: i32, %arg1: i32) -> (i32, i32) {
    %c0_i32 = arith.constant 0 : i32
    %c0_i32_0 = arith.constant 0 : i32
    %c0_i32_1 = arith.constant 0 : i32
    return %c0_i32, %c0_i32_0 : i32, i32
  }
  func.func @transform_5(%arg0: i32, %arg1: i32) -> (i32, i32, i32) {
    %c0_i32 = arith.constant 0 : i32
    %c0_i32_0 = arith.constant 0 : i32
    return %arg0, %c0_i32, %arg1 : i32, i32, i32
  }
}

</mosaic_0001>

<bundles_post_ra>
// kernel: tpu_custom_call.1
= control target key start
LH: loop header
LB: loop body
LE: loop exit
PB: predicated region body
PF: predicated region fallthrough
CT: control target
= control target key end

     0   :  { %10 = vsyncpa [#allocation3], 0  ;;  %s1016_s0 = inlined_call_operand.vmem [shape: f32[2,8,256], index: 0, kind: input, shape index: {}]   ;;  %s1017_s1 = inlined_call_operand.vmem [shape: f32[32,8], index: 1, kind: input, shape index: {}]   ;;  %s1018_s2 = inlined_call_operand.vmem [shape: f32[32,1], index: 2, kind: input, shape index: {}]   ;;  %s1019_s3 = inlined_call_operand.vmem [shape: f32[8,32], index: 3, kind: input, shape index: {}]   ;;  %s1020_s4 = inlined_call_operand.vmem [shape: f32[8,1], index: 4, kind: input, shape index: {}]   ;;  %s1021_s5 = inlined_call_operand.hbm [shape: f32[2,8,256], index: 5, kind: output, shape index: {}]  }
   0x1   :  { %12 = vsyncpa [#allocation3 + $0x1], 0  ;;  %s841_s18 = smov 0   ;;  %s843_s19 = smov 0  }
   0x2   :  { %s845_s20 = smov 0   ;;  %s847_s21 = smov 0  }
   0x3   :  { %s849_s22 = smov 0   ;;  %s851_s23 = smov 0  }
   0x4 LB: > { %s635_s24 = sadd.s32 4294967295, %s806_s23   ;;  %s636_s25 = sadd.s32 4294967294, %s806_s23   ;;  %s806_s23 = sphi %s851_s23, %s18_s23   ;;  %s802_s22 = sphi %s849_s22, %s1028_s22   ;;  %s798_s21 = sphi %s847_s21, %s1027_s21   ;;  %s794_s20 = sphi %s845_s20, %s1026_s20   ;;  %s790_s19 = sphi %s843_s19, %s1025_s19   ;;  %s786_s18 = sphi %s841_s18, %s1024_s18  }
   0x5   : > { %s30_s26 = sadd.s32 1, %s802_s22  ;;  %s151_s27 = sadd.s32 1, %s794_s20 }
   0x6   : > { %p32_p0 = scmp.ge.s32.totalorder %s30_s26, 2  ;;  %p161_p1 = scmp.ne.s32.totalorder %s794_s20, %s790_s19 }
   0x7   : > { %p162_p2 = scmp.eq.s32.totalorder %s635_s24, 1  ;;  %p167_p3 = scmp.ne.s32.totalorder %s790_s19, %s786_s18 }
   0x8   : > { %s1030_s26 = smov (%p32_p0, %s30_s26), 0  ;;  %p168_p5 = scmp.eq.s32.totalorder %s636_s25, 1 }
   0x9   : > { %p881_p4 = por %p162_p2, %p161_p1  ;;  %s146_s29 = ssub.s32 %s802_s22, %s1030_s26 }
   0xa   : > { %p639_p6 = scmp.ge.s32.totalorder %s806_s23, 1  ;;  %p149_p7 = scmp.eq.s32.totalorder %s146_s29, 0 }
   0xb   : > { %p888_p8 = por %p168_p5, %p167_p3  ;;  %p211_p9 = scmp.lt.s32.totalorder %s806_s23, 3 }
   0xc   : > { %s894_s6 = scalar_select %p149_p7, %s794_s20, %s151_s27  }
   0xd   : > { %p212_p10 = pnand %p639_p6, %p211_p9 }
   0xe   : > { %p244_p11 = scmp.lt.s32.totalorder (!%p212_p10), %s798_s21, 1  ;;  %s654_s25 = sshll.u32 (!%p212_p10), %s798_s21, 8 }
   0xf   : > { %215 = sbr.rel (%p212_p10) target bundleno = 485 (0x1e5), region = 40 }
  0x14   : > { %v808_v0 = vmov 0.0   ;;  %v260_v1 = vld [vmem:[%s1018_s2 + $0x8] sm:$0xff]  ;;  %s245_s9 = scalar_select %p244_p11, %s798_s21, 1  ;;  %v809_v2 = vmov 0   ;;  %v262_v3 = vld [vmem:[%s1018_s2 + $0x18] sm:$0xff]  ;;  %v259_v4 = vld [vmem:[%s1018_s2] sm:$0xff] }
  0x15   : > { %363 = vmatprep.mubr.f32.mxu0 %v808_v0  ;;  %533 = vmatprep.mubr.f32.mxu1 %v808_v0  ;;  %v261_v5 = vld [vmem:[%s1018_s2 + $0x10] sm:$0xff]  ;;  %v254_v8 = vld [vmem:[%s1017_s1] sm:$0xff]  ;;  %vm286_vm0 = vcmask 64512   ;;  %v255_v10 = vld [vmem:[%s1017_s1 + $0x8] sm:$0xff]  ;;  %vm465_vm1 = vcmask 261120  }
  0x16   : > { %713 = vset.pattern.permute.xlu1 %v809_v2  ;;  %712 = vset.pattern.permute.xlu0 %v809_v2  ;;  %s653_s12 = sshll.u32 %s245_s9, 4  ;;  %v263_v9 = vld [vmem:[%s1020_s4] sm:$0xff]  ;;  %v256_v11 = vld [vmem:[%s1017_s1 + $0x10] sm:$0xff]  ;;  %v257_v12 = vld [vmem:[%s1017_s1 + $0x18] sm:$0xff]  ;;  %s557_s9 = scalar_lea.hbm %s1021_s5, %s654_s25 }
  0x17   : > { %273 = vperm.xlu1 %713, %v260_v1   ;;  %283 = vperm.xlu0 %712, %v262_v3   ;;  %s251_s17 = scalar_lea.vmem %s1016_s0, %s653_s12  ;;  %s810_s12 = smov [#allocation2]  }
  0x18   : > { %v265_v6 = vld [vmem:[%s251_s17 + $0x8] sm:$0xff]  ;;  %v264_v7 = vld [vmem:[%s251_s17] sm:$0xff]  ;;  %s240_s17 = sand.u32 1, %s790_s19   ;;  %s734_s21 = sshll.u32 %s810_s12, 4  ;;  %s735_s21 = int_to_ptr.vmem [resolvable:$false] %s734_s21 }
  0x19   : > { %329 = vmatprep.subr.mxu0 %v265_v6  ;;  %s640_s24 = sshll.u32 %s240_s17, 4  ;;  %s543_s10 = scalar_lea.sflag [#allocation3], %s240_s17 }
  0x1a   : > { %330 = vmatpush1.msra.mxu0 %v264_v7  ;;  %s242_s27 = scalar_lea.vmem [#allocation2], %s640_s24  ;;  %s736_s13 = scalar_lea.vmem %s735_s21, 512 }
  0x1b   : > { %268 = vperm.xlu1 %713, %v259_v4   ;;  %278 = vperm.xlu0 %712, %v261_v5   ;;  %s559_s29 = sshll.u32 %s242_s27, 4  ;;  %s560_s29 = int_to_ptr.vmem [resolvable:$true] %s559_s29 }
  0x1c   : > { %643 = vmatmul.mubr.msk.f32.vlgmr.msra.gmra.mxu0 %vm286_vm0, %v254_v8  ;;  %s730_s11 = scalar_lea.vmem %s560_s29, 256  ;;  %p737_p1 = scmp.lt.s32.totalorder %s560_s29, %s735_s21 }
  0x1d   : > { %369 = vmatprep.mubr.f32.mxu0 %v808_v0  ;;  %p731_p12 = scmp.ne.s32.totalorder %s560_s29, %s730_s11  ;;  %p738_p2 = scmp.lt.s32.totalorder %s736_s13, %s730_s11 }
  0x1f   : > { %462 = vperm.xlu0 %712, %v263_v9   ;;  %p732_p13 = pnand %p731_p12, %p881_p4  ;;  %p739_p3 = por %p738_p2, %p737_p1 }
  0x20   : > { %644 = vmatmul.mubr.msk.f32.gmra.mxu0 %vm286_vm0, %v255_v10 }
  0x21   : > { %375 = vmatprep.mubr.f32.mxu0 %v808_v0  ;;  %p733_p0 = pneg %p732_p13 }
  0x23   : > { %p740_p5 = pnand %p739_p3, %p733_p0 }
  0x24   : > { %645 = vmatmul.mubr.msk.f32.gmra.mxu0 %vm286_vm0, %v256_v11 }
  0x25   : > { %381 = vmatprep.mubr.f32.mxu0 %v808_v0 }
  0x28   : > { %646 = vmatmul.mubr.msk.f32.gmra.mxu0 %vm286_vm0, %v257_v12 }
  0x92   : > { %v274_v13 = vpop.permute.xlu1 %273  ;;  %v284_v16 = vpop.permute.xlu0 %283 }
  0x96   : > { %v269_v15 = vpop.permute.xlu1 %268  ;;  %v279_v27 = vpop.permute.xlu0 %278 }
  0xdc   : > { %v365_v14 = vpop.f32.mrf.mxu0 }
  0xdd   : > { %v934_v19 = vadd.f32 %v365_v14, %v269_v15 }
  0xde   : > { %v367_v17 = vpop.f32.mrf.mxu0 }
  0xdf   : > { %v932_v18 = vadd.f32 %v367_v17, %v269_v15  ;;  %v388_v28 = vmul.f32 %v934_v19, %v934_v19 }
  0xe0   : > { %v371_v20 = vpop.f32.mrf.mxu0 }
  0xe1   : > { %v389_v21 = vmul.f32 %v932_v18, %v932_v18  ;;  %v938_v22 = vadd.f32 %v371_v20, %v274_v13  ;;  %v396_v37 = vmul.f32 %v388_v28, %v934_v19 }
  0xe2   : > { %v373_v23 = vpop.f32.mrf.mxu0 }
  0xe3   : > { %v397_v24 = vmul.f32 %v389_v21, %v932_v18  ;;  %v390_v25 = vmul.f32 %v938_v22, %v938_v22  ;;  %v943_v26 = vadd.f32 %v373_v23, %v274_v13  ;;  %v404_v49 = vmul.f32 0.044715, %v396_v37 }
  0xe4   : > { %v377_v29 = vpop.f32.mrf.mxu0 }
  0xe5   : > { %v405_v30 = vmul.f32 0.044715, %v397_v24  ;;  %v398_v31 = vmul.f32 %v390_v25, %v938_v22  ;;  %v391_v32 = vmul.f32 %v943_v26, %v943_v26  ;;  %v950_v33 = vadd.f32 %v377_v29, %v279_v27 }
  0xe6   : > { %v379_v34 = vpop.f32.mrf.mxu0  ;;  %v412_v61 = vadd.f32 %v404_v49, %v934_v19 }
  0xe7   : > { %v406_v35 = vmul.f32 0.044715, %v398_v31  ;;  %v399_v36 = vmul.f32 %v391_v32, %v943_v26  ;;  %v392_v38 = vmul.f32 %v950_v33, %v950_v33  ;;  %v956_v39 = vadd.f32 %v379_v34, %v279_v27 }
  0xe8   : > { %v383_v40 = vpop.f32.mrf.mxu0  ;;  %v413_v41 = vadd.f32 %v405_v30, %v932_v18  ;;  %v420_v6 = vmul.f32 0.7978846, %v412_v61 }
  0xe9   : > { %v407_v42 = vmul.f32 0.044715, %v399_v36  ;;  %v414_v43 = vadd.f32 %v406_v35, %v938_v22  ;;  %v400_v44 = vmul.f32 %v392_v38, %v950_v33  ;;  %v393_v45 = vmul.f32 %v956_v39, %v956_v39 }
  0xea   : > { %v384_v46 = vadd.f32 %v383_v40, %v284_v16  ;;  %v385_v47 = vpop.f32.mrf.mxu0  ;;  %v421_v53 = vmul.f32 0.7978846, %v413_v41 }
  0xeb   : > { %v386_v48 = vadd.f32 %v385_v47, %v284_v16  ;;  %v408_v50 = vmul.f32 0.044715, %v400_v44  ;;  %v401_v51 = vmul.f32 %v393_v45, %v956_v39  ;;  %v415_v54 = vadd.f32 %v407_v42, %v943_v26 }
  0xec   : > { %v394_v52 = vmul.f32 %v384_v46, %v384_v46  ;;  %v422_v56 = vmul.f32 0.7978846, %v414_v43  ;;  %714 = vtanh.f32 %v421_v53 }
  0xed   : > { %v395_v55 = vmul.f32 %v386_v48, %v386_v48  ;;  %v416_v57 = vadd.f32 %v408_v50, %v950_v33  ;;  %v409_v58 = vmul.f32 0.044715, %v401_v51  ;;  %v423_v1 = vmul.f32 0.7978846, %v415_v54 }
  0xee   : > { %v402_v59 = vmul.f32 %v394_v52, %v384_v46  ;;  %716 = vtanh.f32 %v422_v56 }
  0xef   : > { %v403_v60 = vmul.f32 %v395_v55, %v386_v48  ;;  %v424_v62 = vmul.f32 0.7978846, %v416_v57  ;;  %v417_v63 = vadd.f32 %v409_v58, %v956_v39 }
  0xf0   : > { %v410_v0 = vmul.f32 0.044715, %v402_v59 }
  0xf1   : > { %v411_v2 = vmul.f32 0.044715, %v403_v60  ;;  %v425_v3 = vmul.f32 0.7978846, %v417_v63  ;;  %718 = vtanh.f32 %v424_v62 }
  0xf2   : > { %v418_v4 = vadd.f32 %v410_v0, %v384_v46 }
  0xf3   : > { %v419_v5 = vadd.f32 %v411_v2, %v386_v48  ;;  %720 = vtanh.f32 %v425_v3 }
  0xf4   : > { %v426_v7 = vmul.f32 0.7978846, %v418_v4  ;;  %722 = vtanh.f32 %v423_v1 }
  0xf5   : > { %v427_v8 = vmul.f32 0.7978846, %v419_v5 }
  0xf6   : > { %724 = vtanh.f32 %v426_v7 }
  0xf7   : > { %726 = vtanh.f32 %v427_v8 }
  0xf8   : > { %728 = vtanh.f32 %v420_v6 }
  0xf9   : > { %v715_v9 = vpop.eup %714 }
  0xfa   : > { %v437_v30 = vadd.f32 1.0, %v715_v9 }
  0xfb   : > { %v717_v10 = vpop.eup %716 }
  0xfc   : > { %v438_v27 = vadd.f32 1.0, %v717_v10  ;;  %v445_v40 = vmul.f32 0.5, %v437_v30 }
  0xfe   : > { %v719_v11 = vpop.eup %718  ;;  %v446_v37 = vmul.f32 0.5, %v438_v27  ;;  %v453_v45 = vmul.f32 %v445_v40, %v932_v18 }
  0xff   : > { %v440_v20 = vadd.f32 1.0, %v719_v11 }
 0x100   : > { %v721_v12 = vpop.eup %720  ;;  %v454_v44 = vmul.f32 %v446_v37, %v938_v22 }
 0x101   : > { %v723_v13 = vpop.eup %722  ;;  %v441_v15 = vadd.f32 1.0, %v721_v12  ;;  %v448_v31 = vmul.f32 0.5, %v440_v20 }
 0x102   : > { %v439_v24 = vadd.f32 1.0, %v723_v13 }
 0x103   : > { %v725_v14 = vpop.eup %724  ;;  %v449_v29 = vmul.f32 0.5, %v441_v15  ;;  %v456_v41 = vmul.f32 %v448_v31, %v950_v33 }
 0x104   : > { %v727_v16 = vpop.eup %726  ;;  %v442_v17 = vadd.f32 1.0, %v725_v14  ;;  %v447_v35 = vmul.f32 0.5, %v439_v24 }
 0x105   : > { %v729_v21 = vpop.eup %728  ;;  %v443_v23 = vadd.f32 1.0, %v727_v16  ;;  %v457_v38 = vmul.f32 %v449_v29, %v956_v39  ;;  %v258_v39 = vld [vmem:[%s1019_s3] sm:$0xff] }
 0x106   : > { %v450_v25 = vmul.f32 0.5, %v442_v17  ;;  %v436_v32 = vadd.f32 1.0, %v729_v21  ;;  %v455_v43 = vmul.f32 %v447_v35, %v943_v26  ;;  %v463_v26 = vpop.permute.xlu0 %462 }
 0x107   : > { %v451_v28 = vmul.f32 0.5, %v443_v23 }
 0x108   : > { %v458_v36 = vmul.f32 %v450_v25, %v384_v46  ;;  %v444_v42 = vmul.f32 0.5, %v436_v32 }
 0x109   : > { %v459_v34 = vmul.f32 %v451_v28, %v386_v48 }
 0x10a   : > { %v452_v46 = vmul.f32 %v444_v42, %v934_v19 }
 0x10b   : > { %493 = vmatprep.subr.mxu1 %v459_v34 }
 0x10c   : > { %494 = vmatpush1.msra.mxu1 %v458_v36 }
 0x10d   : > { %495 = vmatprep.subr.mxu1 %v457_v38 }
 0x10e   : > { %496 = vmatpush1.msra.mxu1 %v456_v41 }
 0x10f   : > { %497 = vmatprep.subr.mxu1 %v455_v43 }
 0x110   : > { %498 = vmatpush1.msra.mxu1 %v454_v44 }
 0x111   : > { %499 = vmatprep.subr.mxu1 %v453_v45 }
 0x112   : > { %500 = vmatpush1.msra.mxu1 %v452_v46 }
 0x113   : > { %647 = vmatmul.mubr.msk.f32.vlgmr.msra.gmra.mxu1 %vm465_vm1, %v258_v39 }
 0x1d3   : > { %v535_v33 = vpop.f32.mrf.mxu1 }
 0x1d4   : > { %v536_v18 = vadd.f32 %v535_v33, %v463_v26 }
 0x1d5   : > { %v537_v22 = vpop.f32.mrf.mxu1 }
 0x1d6   : > { %540 = vst [vmem:[%s242_s27] sm:$0xff] %v536_v18  ;;  %v538_v19 = vadd.f32 %v537_v22, %v463_v26 }
 0x1d8   : > { %541 = vst [vmem:[%s242_s27 + $0x8] sm:$0xff] %v538_v19 }
 0x1d9   : > { %743 = shalt.err (!%p740_p5)
}
 0x1da   : > { %s744_s14 = scalar_lea.hbm %s557_s9, 256  ;;  %s748_s17 = scalar_lea.hbm %s1021_s5, 512 }
 0x1db   : > { %p745_p6 = scmp.ne.s32.totalorder %s557_s9, %s744_s14  ;;  %p749_p10 = scmp.lt.s32.totalorder %s557_s9, %s1021_s5 }
 0x1dc   : > { %p750_p11 = scmp.lt.s32.totalorder %s748_s17, %s744_s14 }
 0x1dd   : > { %p746_p7 = pnand %p745_p6, %p881_p4 }
 0x1de   : > { %p751_p12 = por %p750_p11, %p749_p10 }
 0x1df   : > { %p747_p9 = pneg %p746_p7 }
 0x1e1   : > { %p752_p13 = pnand %p751_p12, %p747_p9 }
 0x1e3   : > { %755 = shalt.err (!%p752_p13)
}
 0x1e4   : > { %655 = dma.vmem_to_hbm [thread:$0]  (%p881_p4), %s560_s29, 256, %s557_s9, %s543_s10  }
 0x1e5 PF: > { %p661_p0 = scmp.ge.s32.totalorder %s806_s23, 2  ;;  %s571_s27 = sand.u32 1, %s786_s18  }
 0x1e6   : > { %s572_s7 = scalar_lea.sflag [#allocation3], %s571_s27 }
 0x1e7   : > { %p658_p1 = pnand %p661_p0, %p888_p8 }
 0x1e9   : > { %p659_p2 = pneg %p658_p1 }
 0x1eb   : > { %781 = dma.done.wait (%p659_p2), %s572_s7, 256  }
 0x1ec   : > { %783 = vsyncadd (%p659_p2), %s572_s7, 4294967040  ;;  %s18_s23 = sadd.s32 1, %s806_s23   ;;  %s1024_s18 = smov %s790_s19 }
 0x1ed   : > { %p15_p3 = scmp.ge.s32.totalorder %s18_s23, 4   ;;  %s1025_s19 = smov %s794_s20 }
 0x1ee   : > { %s1026_s20 = smov %s894_s6  ;;  %s1027_s21 = smov %s802_s22 }
 0x1ef   : > { %s1028_s22 = smov %s1030_s26  ;;  %17 = sbr.rel (!%p15_p3) target bundleno = 4 (0x4), region = 75 }
 0x1f4   :  { %577 = vsyncpa [#allocation3], 1 }
 0x1f5   :  { %579 = vsyncpa [#allocation3 + $0x1], 1 }

</bundles_post_ra>
